<compile_context>
chip_gen: v7x
topology: tpu7x:2x2x1
jax: 0.10.0
libtpu: 0.0.40
codegen_flags: <defaults>
</compile_context>

<pallas_src>
import jax
import jax.numpy as jnp
from jax.experimental import pallas as pl
from jax.experimental.pallas import tpu as pltpu


# ----------------------------- module setup ---------------------------------

def setup_1d(seq_size: int, num_tokens: int):
    if num_tokens <= seq_size:
        patch_size = (seq_size - 1) // num_tokens + 1
        pad_size = patch_size * num_tokens - seq_size
    else:
        patch_size = 1
        pad_size = num_tokens - seq_size
    return patch_size, pad_size


def _round_up(x: int, m: int) -> int:
    return ((x + m - 1) // m) * m


_TM_MAX = 512   # row-tile ceiling; double-buffered tiles fit scoped VMEM on v5e/v6e/v7x
_TK_MAX = 512   # contraction tile used only when K must be split


def _pad_k_e(K: int, E: int):
    """Contraction / output-lane padding + K tile choice (static)."""
    Ep = _round_up(E, 128)                 # lane-dense output stores
    if K <= _TK_MAX:
        tk, Kp = K, K                      # single K step; full-dim block is legal
    else:
        tk = _TK_MAX                       # multiple of 128
        Kp = _round_up(K, tk)
    return tk, Kp, Ep


def _pick_tm(M: int):
    tm = min(_TM_MAX, _round_up(M, 16))    # 16-sublane aligned (bf16-safe)
    Mp = _round_up(M, tm)
    return tm, Mp


# --------------------------- parameter preparation ---------------------------

def prepare_proj_params(w_conv, b_conv):
    """One-time prep (NOT per forward call).

    Conv1d weight (E, C, p) -> bf16 (Kp, Ep) matrix with row index k*C + c so it
    matches the no-transpose patch reshape; bias -> f32 (1, Ep). Zero padding of
    K and E is numerically exact.
    """
    E, C, p = w_conv.shape
    K = C * p
    _, Kp, Ep = _pad_k_e(K, E)
    w_flat = jnp.transpose(w_conv, (2, 1, 0)).reshape(K, E)          # [k*C+c, e]
    w_flat = jnp.pad(w_flat, ((0, Kp - K), (0, Ep - E))).astype(jnp.bfloat16)
    b_row = jnp.pad(b_conv.reshape(1, E).astype(jnp.float32), ((0, 0), (0, Ep - E)))
    return w_flat, b_row


# --------------------------------- kernel ------------------------------------

def _proj_kernel(x_ref, w_ref, b_ref, o_ref, acc_ref):
    # x_ref: (tm, tk) input dtype   w_ref: (tk, Ep) bf16
    # b_ref: (1, Ep) f32            o_ref: (tm, Ep)   acc_ref: (tm, Ep) f32
    k = pl.program_id(1)

    @pl.when(k == 0)
    def _init():
        acc_ref[...] = jnp.zeros_like(acc_ref)

    # bf16 MXU matmul with f32 accumulation; activations are cast in-register so
    # they are read from HBM exactly once in their native dtype.
    acc_ref[...] += jnp.dot(
        x_ref[...].astype(jnp.bfloat16),
        w_ref[...],
        preferred_element_type=jnp.float32,
    )

    @pl.when(k == pl.num_programs(1) - 1)
    def _finalize():
        o_ref[...] = (acc_ref[...] + b_ref[...]).astype(o_ref.dtype)


# -------------------------------- forward ------------------------------------

def order1_conv_input_proj(x, w_flat, b_row, *, seq_size, num_tokens, embed_dim):
    # Accept (B, L, H, W) like the torch module and flatten trailing dims.
    if x.ndim == 4:
        assert x.shape[1] == seq_size
        x = x.reshape(x.shape[0], x.shape[1], -1)
    B, L, C = x.shape
    assert L == seq_size, f"Input sequence length ({L}) doesn't match model ({seq_size})."

    p, pad = setup_1d(seq_size, num_tokens)
    K = C * p
    E = embed_dim
    M = B * num_tokens

    tk, Kp, Ep = _pad_k_e(K, E)
    tm, Mp = _pick_tm(M)
    assert w_flat.shape == (Kp, Ep) and b_row.shape == (1, Ep), \
        "weights not prepared for this (in_chans, patch_size, embed_dim)"

    if pad:
        x = jnp.pad(x, ((0, 0), (0, pad), (0, 0)))
    # Non-overlapping patches: (B, N*p, C) -> (B*N, p*C) is a pure row-major
    # reshape (channel stays lane-major) -> no transpose, no extra HBM traffic.
    patches = x.reshape(M, K)
    if Mp != M or Kp != K:        # zero-pad only when tiling requires it
        patches = jnp.pad(patches, ((0, Mp - M), (0, Kp - K)))

    grid = (Mp // tm, Kp // tk)   # reduction axis (K) last

    # Rough double-buffered VMEM footprint; raise scoped limit where the default
    # (16 MiB on v5e) would be too small, but stay well under v7x's 64 MiB.
    vmem_bytes = (2 * tm * tk * patches.dtype.itemsize      # x tiles (2-buffered)
                  + 2 * tm * Ep * x.dtype.itemsize          # out tiles
                  + 2 * tk * Ep * 2                         # bf16 weight tiles
                  + 2 * Ep * 4                              # bias
                  + tm * Ep * 4)                            # f32 accumulator
    vmem_limit = int(min(max(2 * vmem_bytes, 16 * 2**20), 48 * 2**20))

    out = pl.pallas_call(
        _proj_kernel,
        out_shape=jax.ShapeDtypeStruct((Mp, Ep), x.dtype),
        grid_spec=pltpu.PrefetchScalarGridSpec(
            num_scalar_prefetch=0,
            grid=grid,
            in_specs=[
                pl.BlockSpec((tm, tk), lambda i, k: (i, k)),   # activations
                pl.BlockSpec((tk, Ep), lambda i, k: (k, 0)),   # weight (VMEM-resident per K step)
                pl.BlockSpec((1, Ep), lambda i, k: (0, 0)),    # bias
            ],
            out_specs=pl.BlockSpec((tm, Ep), lambda i, k: (i, 0)),
            scratch_shapes=[pltpu.VMEM((tm, Ep), jnp.float32)],
        ),
        compiler_params=pltpu.CompilerParams(
            dimension_semantics=("parallel", "arbitrary"),
            vmem_limit_bytes=vmem_limit,
        ),
    )(patches, w_flat, b_row)

    # norm_layer=None -> nn.Identity, so nothing further.
    return out[:M, :E].reshape(B, num_tokens, E)


# ------------------------------- reference -----------------------------------

def _reference(x, w_conv, b_conv, seq_size, num_tokens):
    """Pure-JAX reference using a real strided 1D convolution (mirrors torch)."""
    p, pad = setup_1d(seq_size, num_tokens)
    xc = jnp.transpose(x, (0, 2, 1))                         # (B, C, L)
    xc = jnp.pad(xc, ((0, 0), (0, 0), (0, pad)))
    y = jax.lax.conv_general_dilated(
        xc, w_conv, window_strides=(p,), padding="VALID",
        dimension_numbers=("NCH", "OIH", "NCH"),
    )
    y = y + b_conv.reshape(1, -1, 1)
    return jnp.transpose(y, (0, 2, 1))                       # (B, N, E)


# ---------------------------------- main --------------------------------------

if __name__ == "__main__":

    def run_case(B, seq_size, in_chans, num_tokens, embed_dim, key):
        kx, kw, kb = jax.random.split(key, 3)
        p, _ = setup_1d(seq_size, num_tokens)
        x = jax.random.normal(kx, (B, seq_size, in_chans), dtype=jnp.float32)
        w_conv = 0.1 * jax.random.normal(kw, (embed_dim, in_chans, p), dtype=jnp.float32)
        b_conv = 0.1 * jax.random.normal(kb, (embed_dim,), dtype=jnp.float32)

        w_flat, b_row = prepare_proj_params(w_conv, b_conv)
        out = order1_conv_input_proj(
            x, w_flat, b_row,
            seq_size=seq_size, num_tokens=num_tokens, embed_dim=embed_dim)
        out = jax.block_until_ready(out)
        assert out.shape == (B, num_tokens, embed_dim)

        ref = _reference(x, w_conv, b_conv, seq_size, num_tokens)
        err = float(jnp.max(jnp.abs(out - ref)) / (jnp.max(jnp.abs(ref)) + 1e-6))
        assert err < 2e-2, f"max relative error too large: {err}"

    key = jax.random.PRNGKey(0)
    k1, k2 = jax.random.split(key)

    # Small spec-sized case: B=2, seq=16, C=4, num_tokens=8, embed_dim=32
    # (patch=2, pad=0, K=8 -> single K step).
    run_case(B=2, seq_size=16, in_chans=4, num_tokens=8, embed_dim=32, key=k1)

    # Larger-contraction case: K = 12*64 = 768 > 512 -> exercises the tiled-K
    # ("arbitrary") accumulator path with pl.when init/finalize.
    run_case(B=2, seq_size=96, in_chans=64, num_tokens=8, embed_dim=32, key=k2)

    print("KERNEL_OK")
</pallas_src>

<mosaic_0001>
module attributes {stable_mosaic.version = 11 : i64} {
  func.func @_proj_kernel(%arg0: i32, %arg1: i32, %arg2: memref<16x8xf32, #tpu.memory_space<vmem>>, %arg3: memref<8x128xbf16, #tpu.memory_space<vmem>>, %arg4: memref<1x128xf32, #tpu.memory_space<vmem>>, %arg5: memref<16x128xf32, #tpu.memory_space<vmem>>, %arg6: memref<16x128xf32, #tpu.memory_space<vmem>>) attributes {dimension_semantics = [#tpu.dimension_semantics<parallel>, #tpu.dimension_semantics<arbitrary>], iteration_bounds = array<i64: 1, 1>, scalar_prefetch = 0 : i64, scratch_operands = 1 : i64, tpu.core_type = #tpu.core_type<tc>, window_params = [{transform_indices = @transform_0, window_bounds = array<i64: 16, 8>}, {transform_indices = @transform_1, window_bounds = array<i64: 8, 128>}, {pipeline_mode = #tpu.pipeline_mode<synchronous>, transform_indices = @transform_2, window_bounds = array<i64: 1, 128>}, {transform_indices = @transform_3, window_bounds = array<i64: 16, 128>}]} {
    %c0_i32 = arith.constant 0 : i32
    %0 = arith.cmpi eq, %arg1, %c0_i32 : i32
    %1 = arith.extui %0 : i1 to i32
    %c0_i32_0 = arith.constant 0 : i32
    %2 = arith.cmpi ne, %1, %c0_i32_0 : i32
    scf.if %2 {
      %cst_10 = arith.constant 0.000000e+00 : f32
      %13 = vector.broadcast %cst_10 : f32 to vector<16x128xf32>
      %c0_11 = arith.constant 0 : index
      %c0_12 = arith.constant 0 : index
      %14 = vector.load %arg6[%c0_11, %c0_12] : memref<16x128xf32, #tpu.memory_space<vmem>>, vector<16x128xf32>
      tpu.vector_store %arg6[%c0_11, %c0_12], %13 {strides = array<i32>} : memref<16x128xf32, #tpu.memory_space<vmem>>, vector<16x128xf32>,
    } else {
    }
    %c0 = arith.constant 0 : index
    %c0_1 = arith.constant 0 : index
    %3 = vector.load %arg6[%c0, %c0_1] : memref<16x128xf32, #tpu.memory_space<vmem>>, vector<16x128xf32>
    %c0_2 = arith.constant 0 : index
    %c0_3 = arith.constant 0 : index
    %4 = vector.load %arg2[%c0_2, %c0_3] : memref<16x8xf32, #tpu.memory_space<vmem>>, vector<16x8xf32>
    %5 = arith.truncf %4 : vector<16x8xf32> to vector<16x8xbf16>
    %c0_4 = arith.constant 0 : index
    %c0_5 = arith.constant 0 : index
    %6 = vector.load %arg3[%c0_4, %c0_5] : memref<8x128xbf16, #tpu.memory_space<vmem>>, vector<8x128xbf16>
    %cst = arith.constant dense<0.000000e+00> : vector<16x128xf32>
    %7 = tpu.matmul %5, %6, %cst {dimension_numbers = #tpu.dot_dimension_numbers<[1], [0], [0], [1], [0, 0, 1, 1], [], []>} : vector<16x8xbf16>, vector<8x128xbf16>, vector<16x128xf32> -> vector<16x128xf32>
    %8 = arith.addf %3, %7 : vector<16x128xf32>
    %c0_6 = arith.constant 0 : index
    %c0_7 = arith.constant 0 : index
    %9 = vector.load %arg6[%c0_6, %c0_7] : memref<16x128xf32, #tpu.memory_space<vmem>>, vector<16x128xf32>
    tpu.vector_store %arg6[%c0_6, %c0_7], %8 {strides = array<i32>} : memref<16x128xf32, #tpu.memory_space<vmem>>, vector<16x128xf32>,
    %c0_i32_8 = arith.constant 0 : i32
    %10 = arith.cmpi eq, %arg1, %c0_i32_8 : i32
    %11 = arith.extui %10 : i1 to i32
    %c0_i32_9 = arith.constant 0 : i32
    %12 = arith.cmpi ne, %11, %c0_i32_9 : i32
    scf.if %12 {
      %c0_10 = arith.constant 0 : index
      %c0_11 = arith.constant 0 : index
      %13 = vector.load %arg6[%c0_10, %c0_11] : memref<16x128xf32, #tpu.memory_space<vmem>>, vector<16x128xf32>
      %c0_12 = arith.constant 0 : index
      %c0_13 = arith.constant 0 : index
      %14 = vector.load %arg4[%c0_12, %c0_13] : memref<1x128xf32, #tpu.memory_space<vmem>>, vector<1x128xf32>
      %15 = vector.broadcast %14 : vector<1x128xf32> to vector<16x128xf32>
      %16 = arith.addf %13, %15 : vector<16x128xf32>
      %c0_14 = arith.constant 0 : index
      %c0_15 = arith.constant 0 : index
      %17 = vector.load %arg5[%c0_14, %c0_15] : memref<16x128xf32, #tpu.memory_space<vmem>>, vector<16x128xf32>
      tpu.vector_store %arg5[%c0_14, %c0_15], %16 {strides = array<i32>} : memref<16x128xf32, #tpu.memory_space<vmem>>, vector<16x128xf32>,
    } else {
    }
    return
  }
  func.func @transform_0(%arg0: i32, %arg1: i32) -> (i32, i32) {
    %c0_i32 = arith.constant 0 : i32
    return %arg0, %arg1 : i32, i32
  }
  func.func @transform_1(%arg0: i32, %arg1: i32) -> (i32, i32) {
    %c0_i32 = arith.constant 0 : i32
    %c0_i32_0 = arith.constant 0 : i32
    return %arg1, %c0_i32 : i32, i32
  }
  func.func @transform_2(%arg0: i32, %arg1: i32) -> (i32, i32) {
    %c0_i32 = arith.constant 0 : i32
    %c0_i32_0 = arith.constant 0 : i32
    %c0_i32_1 = arith.constant 0 : i32
    return %c0_i32, %c0_i32_0 : i32, i32
  }
  func.func @transform_3(%arg0: i32, %arg1: i32) -> (i32, i32) {
    %c0_i32 = arith.constant 0 : i32
    %c0_i32_0 = arith.constant 0 : i32
    return %arg0, %c0_i32 : i32, i32
  }
}

</mosaic_0001>

<bundles_post_ra>
// kernel: tpu_custom_call.1
= control target key start
LH: loop header
LB: loop body
LE: loop exit
PB: predicated region body
PF: predicated region fallthrough
CT: control target
= control target key end

     0   :  { %vm32_vm0 = vcmask 1043456   ;;  %v152_v2 = vmov 0.0   ;;  %vm153_vm1 = vmmov 0   ;;  %s201_s0 = inlined_call_operand.vmem [shape: f32[16,8], index: 0, kind: input, shape index: {}]   ;;  %s202_s1 = inlined_call_operand.vmem [shape: bf16[8,128], index: 1, kind: input, shape index: {}]   ;;  %s203_s2 = inlined_call_operand.vmem [shape: f32[1,128], index: 2, kind: input, shape index: {}]   ;;  %s204_s3 = inlined_call_operand.hbm [shape: f32[16,128], index: 3, kind: output, shape index: {}]  }
   0x1   :  { %v27_v0 = vld [vmem:[%s202_s1] sm:$0xf]  ;;  %117 = vmatprep.subr.bf16.mxu0 %v152_v2  ;;  %119 = vmatprep.mubr.msk.bf16.mxu0 %vm153_vm1, %v152_v2  ;;  %v25_v4 = vld [vmem:[%s201_s0 + $0x8] sm:$0xff] }
   0x2   :  { %v24_v1 = vld [vmem:[%s201_s0] sm:$0xff]  ;;  %v34_v3 = vsel %vm32_vm0, %v27_v0, 0 }
   0x3   :  { %8 = vsyncpa [#allocation4], 0  ;;  %118 = vmatpush3.bf16.msra.mxu0 %v34_v3  ;;  %v26_v5 = vpack.c.bf16 %v25_v4, %v24_v1  ;;  %vm28_vm2 = vcmask 64512   ;;  %v114_v6 = vld [vmem:[%s203_s2] ss:$0 sm:$0xff]  ;;  %s154_s19 = smov [#allocation3]  }
   0x4   :  { %s102_s20 = sshll.u32 %s154_s19, 4  ;;  %s103_s20 = int_to_ptr.vmem [resolvable:$true] %s102_s20 }
   0x5   :  { %s128_s0 = scalar_lea.vmem %s103_s20, 256  ;;  %p133_p1 = scmp.lt.s32.totalorder %s103_s20, %s103_s20 }
   0x6   :  { %120 = vmatmul.mubr.msk.bf16.vlgmr.msra.gmra.mrb[0].mxu0 %vm28_vm2, %v26_v5  ;;  %p129_p0 = scmp.ne.s32.totalorder %s103_s20, %s128_s0  ;;  %p134_p2 = scmp.lt.s32.totalorder %s128_s0, %s128_s0 }
   0x8   :  { %p135_p3 = por %p134_p2, %p133_p1 }
   0xa   :  { %p136_p4 = pnand %p135_p3, %p129_p0 }
  0xd9   :  { %v70_v7 = vpop.f32.mrb[0].mxu0 }
  0xda   :  { %v93_v8 = vadd.f32 %v114_v6, %v70_v7  ;;  %v121_v9 = vpop.f32.mrb[1].mxu0 }
  0xdb   :  { %v73_v10 = vpop.f32.mrb[2].mxu0 }
  0xdc   :  { %95 = vst [vmem:[#allocation3] sm:$0xff] %v93_v8  ;;  %v94_v11 = vadd.f32 %v114_v6, %v73_v10  ;;  %v122_v12 = vpop.f32.mrb[3].mxu0 }
  0xde   :  { %96 = vst [vmem:[#allocation3 + $0x8] sm:$0xff] %v94_v11 }
  0xdf   :  { %139 = shalt.err (!%p136_p4)
}
  0xe0   :  { %s140_s22 = scalar_lea.hbm %s204_s3, 256 }
  0xe1   :  { %p141_p5 = scmp.ne.s32.totalorder %s204_s3, %s140_s22  ;;  %p144_p6 = scmp.lt.u32.totalorder %s140_s22, %s204_s3 }
  0xe3   :  { %p146_p7 = pnand %p144_p6, %p141_p5 }
  0xe5   :  { %149 = shalt.err (!%p146_p7)
}
  0xe6   :  { %s155_s27 = smov 128   ;;  %s156_s28 = smov 8  }
  0xe7   :  { %108 = dma.vmem_to_hbm [thread:$0]  %s103_s20, 256, %s204_s3, [#allocation4], %s155_s27, %s155_s27, %s156_s28  }
  0xe8   :  { %150 = dma.done.wait [#allocation4], 256  }
  0xe9   :  { %151 = vsyncadd [#allocation4], 4294967040 }
  0xea   :  { %112 = vsyncpa [#allocation4], 1 }

</bundles_post_ra>
